<compile_context>
chip_gen: v7x
topology: tpu7x:2x2x1
jax: 0.10.0
libtpu: 0.0.40
codegen_flags: <defaults>
</compile_context>

<pallas_src>
import math

import jax
import jax.numpy as jnp
from jax.experimental import pallas as pl
from jax.experimental.pallas import tpu as pltpu

# ---- problem sizes (small, consistent with the module defaults) ------------
N = 2           # batch
C = 8           # in_channels == out_channels (residual requires equality)
T = 128         # temporal length (lane axis; exactly one vreg wide)
K = 9           # kernel_size
PAD = (K - 1) // 2
PW = 2 * K + 2  # packed params per channel: [w1 (K) | w2 (K) | b1 (1) | b2 (1)]


# ---- Pallas kernel ----------------------------------------------------------
def tcn_kernel(x_ref, p_ref, out_ref):
    # x_ref  : (C, T)   one batch's rows (channels on sublanes, time on lanes)
    # p_ref  : (C, PW)  packed per-channel params [w1 | w2 | b1 | b2]
    # out_ref: (C, T)
    x = x_ref[...].astype(jnp.float32)
    p = p_ref[...].astype(jnp.float32)
    t = x.shape[1]                                   # == full temporal length

    w1 = p[:, 0:K]
    w2 = p[:, K:2 * K]
    b1 = p[:, 2 * K:2 * K + 1]
    b2 = p[:, 2 * K + 1:2 * K + 2]

    # One iota held; per-tap masks are recomputed inside each conv (1 compare
    # per tap) to keep vreg/vmask pressure low across the GELU temporaries.
    iota = jax.lax.broadcasted_iota(jnp.int32, x.shape, 1)

    def dconv(v, w, b):
        # Depthwise cross-correlation with 'same' zero padding, K taps
        # statically unrolled.  Tap shift via pltpu.roll (XLU) + mask;
        # valid only because the block covers the full temporal axis.
        acc = jnp.zeros(v.shape, jnp.float32)
        for k in range(K):
            s = k - PAD                              # shift in -4..+4
            if s == 0:
                vs = v
            else:
                vr = pltpu.roll(v, shift=(-s) % t, axis=1)   # vr[i] = v[i+s] (mod t)
                m = (iota < (t - s)) if s > 0 else (iota >= (-s))
                vs = jnp.where(m, vr, 0.0)
            acc = acc + w[:, k:k + 1] * vs
        return acc + b

    def gelu(v):
        # tanh-form GELU: transcendental on the EUP, short VALU chain.
        c = 0.7978845608028654  # sqrt(2/pi)
        return 0.5 * v * (1.0 + jnp.tanh(c * (v + 0.044715 * v * v * v)))

    y = gelu(dconv(x, w1, b1))
    y = gelu(dconv(y, w2, b2))
    out_ref[...] = (y + x).astype(out_ref.dtype)     # residual


# ---- wrapper ----------------------------------------------------------------
@jax.jit
def tcn_unit(x, w1, b1, w2, b2):
    """x: (N, C, T) float32; weights (C, K); biases (C, 1). Returns (N, C, T)."""
    n, c, t = x.shape
    assert c % 8 == 0 and t % 128 == 0, "sublane/lane alignment"
    x2d = x.reshape(n * c, t)                        # contiguous, free reshape
    # Pack the tiny parameters once: (C, 2K+2) ~ 704 B; no batch tiling here —
    # the params BlockSpec maps every grid step to block (0, 0).
    params = jnp.concatenate([w1, w2, b1, b2], axis=1)

    flops = 2 * n * c * t * (2 * K + 1) + 2 * n * c * t * 8 + n * c * t
    bytes_accessed = 2 * x2d.size * x2d.dtype.itemsize + params.size * 4
    transcendentals = 2 * n * c * t                   # one tanh per GELU elem

    out = pl.pallas_call(
        tcn_kernel,
        out_shape=jax.ShapeDtypeStruct((n * c, t), x.dtype),
        grid=(n,),                                    # one row-block per batch
        in_specs=[
            pl.BlockSpec((c, t), lambda i: (i, 0)),   # x rows for batch i
            pl.BlockSpec((c, PW), lambda i: (0, 0)),  # shared params
        ],
        out_specs=pl.BlockSpec((c, t), lambda i: (i, 0)),
        compiler_params=pltpu.CompilerParams(
            dimension_semantics=("parallel",)),       # v7x: split rows over TCs
        cost_estimate=pl.CostEstimate(
            flops=flops, bytes_accessed=bytes_accessed,
            transcendentals=transcendentals),
        # Safe: output block i depends only on input block i (same rows),
        # which is fully loaded into VMEM before the output is written back.
        input_output_aliases={0: 0},
    )(x2d, params)
    return out.reshape(n, c, t)


# ---- pure-JAX references (PyTorch Conv1d groups=C semantics) ----------------
def tcn_reference(x, w1, b1, w2, b2, approximate):
    c = x.shape[1]

    def dconv(inp, w, b):
        y = jax.lax.conv_general_dilated(
            inp, w[:, None, :], window_strides=(1,), padding=[(PAD, PAD)],
            dimension_numbers=("NCH", "OIH", "NCH"),
            feature_group_count=c, precision=jax.lax.Precision.HIGHEST)
        return y + b[None, :, :]

    y = jax.nn.gelu(dconv(x, w1, b1), approximate=approximate)
    y = jax.nn.gelu(dconv(y, w2, b2), approximate=approximate)
    return y + x


if __name__ == "__main__":
    key = jax.random.PRNGKey(0)
    k1, k2, kx = jax.random.split(key, 3)

    # conv_init: kaiming_normal_(mode='fan_out') -> std = sqrt(2/(C*K)); bias = 0
    std = math.sqrt(2.0 / (C * K))
    w1 = jax.random.normal(k1, (C, K), jnp.float32) * std
    w2 = jax.random.normal(k2, (C, K), jnp.float32) * std
    b1 = jnp.zeros((C, 1), jnp.float32)
    b2 = jnp.zeros((C, 1), jnp.float32)

    x = jax.random.normal(kx, (N, C, T), jnp.float32)

    out = jax.block_until_ready(tcn_unit(x, w1, b1, w2, b2))
    assert out.shape == (N, C, T)

    # Tight check against a reference using the same tanh-GELU math.
    ref_tanh = tcn_reference(x, w1, b1, w2, b2, approximate=True)
    assert bool(jnp.allclose(out, ref_tanh, atol=5e-4, rtol=5e-4)), \
        "mismatch vs tanh-GELU reference"

    # Looser check against the exact erf-GELU semantics of nn.GELU().
    ref_exact = tcn_reference(x, w1, b1, w2, b2, approximate=False)
    assert bool(jnp.allclose(out, ref_exact, atol=2e-3, rtol=2e-3)), \
        "mismatch vs exact-GELU reference"

    print("KERNEL_OK")
</pallas_src>

<mosaic_0001>
module attributes {stable_mosaic.version = 11 : i64} {
  func.func @tcn_kernel(%arg0: i32, %arg1: memref<8x128xf32, #tpu.memory_space<vmem>>, %arg2: memref<8x20xf32, #tpu.memory_space<vmem>>, %arg3: memref<8x128xf32, #tpu.memory_space<vmem>>) attributes {dimension_semantics = [#tpu.dimension_semantics<parallel>], iteration_bounds = array<i64: 2>, scalar_prefetch = 0 : i64, scratch_operands = 0 : i64, tpu.core_type = #tpu.core_type<tc>, window_params = [{transform_indices = @transform_0, window_bounds = array<i64: 8, 128>}, {pipeline_mode = #tpu.pipeline_mode<synchronous>, transform_indices = @transform_1, window_bounds = array<i64: 8, 20>}, {transform_indices = @transform_2, window_bounds = array<i64: 8, 128>}]} {
    %c0 = arith.constant 0 : index
    %c0_0 = arith.constant 0 : index
    %0 = vector.load %arg1[%c0, %c0_0] : memref<8x128xf32, #tpu.memory_space<vmem>>, vector<8x128xf32>
    %c0_1 = arith.constant 0 : index
    %c0_2 = arith.constant 0 : index
    %1 = vector.load %arg2[%c0_1, %c0_2] : memref<8x20xf32, #tpu.memory_space<vmem>>, vector<8x20xf32>
    %2 = vector.extract_strided_slice %1 {offsets = [0, 0], sizes = [8, 9], strides = [1, 1]} : vector<8x20xf32> to vector<8x9xf32>
    %3 = vector.extract_strided_slice %1 {offsets = [0, 9], sizes = [8, 9], strides = [1, 1]} : vector<8x20xf32> to vector<8x9xf32>
    %4 = vector.extract_strided_slice %1 {offsets = [0, 18], sizes = [8, 1], strides = [1, 1]} : vector<8x20xf32> to vector<8x1xf32>
    %5 = vector.extract_strided_slice %1 {offsets = [0, 19], sizes = [8, 1], strides = [1, 1]} : vector<8x20xf32> to vector<8x1xf32>
    %6 = tpu.iota {dimensions = array<i32: 1>} : vector<8x128xi32>
    %cst = arith.constant 0.000000e+00 : f32
    %7 = vector.broadcast %cst : f32 to vector<8x128xf32>
    %c4_i32 = arith.constant 4 : i32
    %8 = tpu.dynamic_rotate %0 by %c4_i32 dim 1 : vector<8x128xf32>, i32 -> vector<8x128xf32>
    %c4_i32_3 = arith.constant 4 : i32
    %9 = vector.broadcast %c4_i32_3 : i32 to vector<8x128xi32>
    %10 = arith.cmpi sge, %6, %9 : vector<8x128xi32>
    %cst_4 = arith.constant 0.000000e+00 : f32
    %11 = vector.broadcast %cst_4 : f32 to vector<8x128xf32>
    %12 = arith.select %10, %8, %11 : vector<8x128xi1>, vector<8x128xf32>
    %13 = vector.extract_strided_slice %2 {offsets = [0, 0], sizes = [8, 1], strides = [1, 1]} : vector<8x9xf32> to vector<8x1xf32>
    %14 = vector.broadcast %13 : vector<8x1xf32> to vector<8x128xf32>
    %15 = arith.mulf %14, %12 : vector<8x128xf32>
    %16 = arith.addf %7, %15 : vector<8x128xf32>
    %c3_i32 = arith.constant 3 : i32
    %17 = tpu.dynamic_rotate %0 by %c3_i32 dim 1 : vector<8x128xf32>, i32 -> vector<8x128xf32>
    %c3_i32_5 = arith.constant 3 : i32
    %18 = vector.broadcast %c3_i32_5 : i32 to vector<8x128xi32>
    %19 = arith.cmpi sge, %6, %18 : vector<8x128xi32>
    %cst_6 = arith.constant 0.000000e+00 : f32
    %20 = vector.broadcast %cst_6 : f32 to vector<8x128xf32>
    %21 = arith.select %19, %17, %20 : vector<8x128xi1>, vector<8x128xf32>
    %22 = vector.extract_strided_slice %2 {offsets = [0, 1], sizes = [8, 1], strides = [1, 1]} : vector<8x9xf32> to vector<8x1xf32>
    %23 = vector.broadcast %22 : vector<8x1xf32> to vector<8x128xf32>
    %24 = arith.mulf %23, %21 : vector<8x128xf32>
    %25 = arith.addf %16, %24 : vector<8x128xf32>
    %c2_i32 = arith.constant 2 : i32
    %26 = tpu.dynamic_rotate %0 by %c2_i32 dim 1 : vector<8x128xf32>, i32 -> vector<8x128xf32>
    %c2_i32_7 = arith.constant 2 : i32
    %27 = vector.broadcast %c2_i32_7 : i32 to vector<8x128xi32>
    %28 = arith.cmpi sge, %6, %27 : vector<8x128xi32>
    %cst_8 = arith.constant 0.000000e+00 : f32
    %29 = vector.broadcast %cst_8 : f32 to vector<8x128xf32>
    %30 = arith.select %28, %26, %29 : vector<8x128xi1>, vector<8x128xf32>
    %31 = vector.extract_strided_slice %2 {offsets = [0, 2], sizes = [8, 1], strides = [1, 1]} : vector<8x9xf32> to vector<8x1xf32>
    %32 = vector.broadcast %31 : vector<8x1xf32> to vector<8x128xf32>
    %33 = arith.mulf %32, %30 : vector<8x128xf32>
    %34 = arith.addf %25, %33 : vector<8x128xf32>
    %c1_i32 = arith.constant 1 : i32
    %35 = tpu.dynamic_rotate %0 by %c1_i32 dim 1 : vector<8x128xf32>, i32 -> vector<8x128xf32>
    %c1_i32_9 = arith.constant 1 : i32
    %36 = vector.broadcast %c1_i32_9 : i32 to vector<8x128xi32>
    %37 = arith.cmpi sge, %6, %36 : vector<8x128xi32>
    %cst_10 = arith.constant 0.000000e+00 : f32
    %38 = vector.broadcast %cst_10 : f32 to vector<8x128xf32>
    %39 = arith.select %37, %35, %38 : vector<8x128xi1>, vector<8x128xf32>
    %40 = vector.extract_strided_slice %2 {offsets = [0, 3], sizes = [8, 1], strides = [1, 1]} : vector<8x9xf32> to vector<8x1xf32>
    %41 = vector.broadcast %40 : vector<8x1xf32> to vector<8x128xf32>
    %42 = arith.mulf %41, %39 : vector<8x128xf32>
    %43 = arith.addf %34, %42 : vector<8x128xf32>
    %44 = vector.extract_strided_slice %2 {offsets = [0, 4], sizes = [8, 1], strides = [1, 1]} : vector<8x9xf32> to vector<8x1xf32>
    %45 = vector.broadcast %44 : vector<8x1xf32> to vector<8x128xf32>
    %46 = arith.mulf %45, %0 : vector<8x128xf32>
    %47 = arith.addf %43, %46 : vector<8x128xf32>
    %c127_i32 = arith.constant 127 : i32
    %48 = tpu.dynamic_rotate %0 by %c127_i32 dim 1 : vector<8x128xf32>, i32 -> vector<8x128xf32>
    %c127_i32_11 = arith.constant 127 : i32
    %49 = vector.broadcast %c127_i32_11 : i32 to vector<8x128xi32>
    %50 = arith.cmpi slt, %6, %49 : vector<8x128xi32>
    %cst_12 = arith.constant 0.000000e+00 : f32
    %51 = vector.broadcast %cst_12 : f32 to vector<8x128xf32>
    %52 = arith.select %50, %48, %51 : vector<8x128xi1>, vector<8x128xf32>
    %53 = vector.extract_strided_slice %2 {offsets = [0, 5], sizes = [8, 1], strides = [1, 1]} : vector<8x9xf32> to vector<8x1xf32>
    %54 = vector.broadcast %53 : vector<8x1xf32> to vector<8x128xf32>
    %55 = arith.mulf %54, %52 : vector<8x128xf32>
    %56 = arith.addf %47, %55 : vector<8x128xf32>
    %c126_i32 = arith.constant 126 : i32
    %57 = tpu.dynamic_rotate %0 by %c126_i32 dim 1 : vector<8x128xf32>, i32 -> vector<8x128xf32>
    %c126_i32_13 = arith.constant 126 : i32
    %58 = vector.broadcast %c126_i32_13 : i32 to vector<8x128xi32>
    %59 = arith.cmpi slt, %6, %58 : vector<8x128xi32>
    %cst_14 = arith.constant 0.000000e+00 : f32
    %60 = vector.broadcast %cst_14 : f32 to vector<8x128xf32>
    %61 = arith.select %59, %57, %60 : vector<8x128xi1>, vector<8x128xf32>
    %62 = vector.extract_strided_slice %2 {offsets = [0, 6], sizes = [8, 1], strides = [1, 1]} : vector<8x9xf32> to vector<8x1xf32>
    %63 = vector.broadcast %62 : vector<8x1xf32> to vector<8x128xf32>
    %64 = arith.mulf %63, %61 : vector<8x128xf32>
    %65 = arith.addf %56, %64 : vector<8x128xf32>
    %c125_i32 = arith.constant 125 : i32
    %66 = tpu.dynamic_rotate %0 by %c125_i32 dim 1 : vector<8x128xf32>, i32 -> vector<8x128xf32>
    %c125_i32_15 = arith.constant 125 : i32
    %67 = vector.broadcast %c125_i32_15 : i32 to vector<8x128xi32>
    %68 = arith.cmpi slt, %6, %67 : vector<8x128xi32>
    %cst_16 = arith.constant 0.000000e+00 : f32
    %69 = vector.broadcast %cst_16 : f32 to vector<8x128xf32>
    %70 = arith.select %68, %66, %69 : vector<8x128xi1>, vector<8x128xf32>
    %71 = vector.extract_strided_slice %2 {offsets = [0, 7], sizes = [8, 1], strides = [1, 1]} : vector<8x9xf32> to vector<8x1xf32>
    %72 = vector.broadcast %71 : vector<8x1xf32> to vector<8x128xf32>
    %73 = arith.mulf %72, %70 : vector<8x128xf32>
    %74 = arith.addf %65, %73 : vector<8x128xf32>
    %c124_i32 = arith.constant 124 : i32
    %75 = tpu.dynamic_rotate %0 by %c124_i32 dim 1 : vector<8x128xf32>, i32 -> vector<8x128xf32>
    %c124_i32_17 = arith.constant 124 : i32
    %76 = vector.broadcast %c124_i32_17 : i32 to vector<8x128xi32>
    %77 = arith.cmpi slt, %6, %76 : vector<8x128xi32>
    %cst_18 = arith.constant 0.000000e+00 : f32
    %78 = vector.broadcast %cst_18 : f32 to vector<8x128xf32>
    %79 = arith.select %77, %75, %78 : vector<8x128xi1>, vector<8x128xf32>
    %80 = vector.extract_strided_slice %2 {offsets = [0, 8], sizes = [8, 1], strides = [1, 1]} : vector<8x9xf32> to vector<8x1xf32>
    %81 = vector.broadcast %80 : vector<8x1xf32> to vector<8x128xf32>
    %82 = arith.mulf %81, %79 : vector<8x128xf32>
    %83 = arith.addf %74, %82 : vector<8x128xf32>
    %84 = vector.broadcast %4 : vector<8x1xf32> to vector<8x128xf32>
    %85 = arith.addf %83, %84 : vector<8x128xf32>
    %cst_19 = arith.constant 5.000000e-01 : f32
    %86 = vector.broadcast %cst_19 : f32 to vector<8x128xf32>
    %87 = arith.mulf %86, %85 : vector<8x128xf32>
    %cst_20 = arith.constant 4.471500e-02 : f32
    %88 = vector.broadcast %cst_20 : f32 to vector<8x128xf32>
    %89 = arith.mulf %88, %85 : vector<8x128xf32>
    %90 = arith.mulf %89, %85 : vector<8x128xf32>
    %91 = arith.mulf %90, %85 : vector<8x128xf32>
    %92 = arith.addf %85, %91 : vector<8x128xf32>
    %cst_21 = arith.constant 0.797884583 : f32
    %93 = vector.broadcast %cst_21 : f32 to vector<8x128xf32>
    %94 = arith.mulf %93, %92 : vector<8x128xf32>
    %95 = math.tanh %94 : vector<8x128xf32>
    %cst_22 = arith.constant 1.000000e+00 : f32
    %96 = vector.broadcast %cst_22 : f32 to vector<8x128xf32>
    %97 = arith.addf %96, %95 : vector<8x128xf32>
    %98 = arith.mulf %87, %97 : vector<8x128xf32>
    %cst_23 = arith.constant 0.000000e+00 : f32
    %99 = vector.broadcast %cst_23 : f32 to vector<8x128xf32>
    %c4_i32_24 = arith.constant 4 : i32
    %100 = tpu.dynamic_rotate %98 by %c4_i32_24 dim 1 : vector<8x128xf32>, i32 -> vector<8x128xf32>
    %c4_i32_25 = arith.constant 4 : i32
    %101 = vector.broadcast %c4_i32_25 : i32 to vector<8x128xi32>
    %102 = arith.cmpi sge, %6, %101 : vector<8x128xi32>
    %cst_26 = arith.constant 0.000000e+00 : f32
    %103 = vector.broadcast %cst_26 : f32 to vector<8x128xf32>
    %104 = arith.select %102, %100, %103 : vector<8x128xi1>, vector<8x128xf32>
    %105 = vector.extract_strided_slice %3 {offsets = [0, 0], sizes = [8, 1], strides = [1, 1]} : vector<8x9xf32> to vector<8x1xf32>
    %106 = vector.broadcast %105 : vector<8x1xf32> to vector<8x128xf32>
    %107 = arith.mulf %106, %104 : vector<8x128xf32>
    %108 = arith.addf %99, %107 : vector<8x128xf32>
    %c3_i32_27 = arith.constant 3 : i32
    %109 = tpu.dynamic_rotate %98 by %c3_i32_27 dim 1 : vector<8x128xf32>, i32 -> vector<8x128xf32>
    %c3_i32_28 = arith.constant 3 : i32
    %110 = vector.broadcast %c3_i32_28 : i32 to vector<8x128xi32>
    %111 = arith.cmpi sge, %6, %110 : vector<8x128xi32>
    %cst_29 = arith.constant 0.000000e+00 : f32
    %112 = vector.broadcast %cst_29 : f32 to vector<8x128xf32>
    %113 = arith.select %111, %109, %112 : vector<8x128xi1>, vector<8x128xf32>
    %114 = vector.extract_strided_slice %3 {offsets = [0, 1], sizes = [8, 1], strides = [1, 1]} : vector<8x9xf32> to vector<8x1xf32>
    %115 = vector.broadcast %114 : vector<8x1xf32> to vector<8x128xf32>
    %116 = arith.mulf %115, %113 : vector<8x128xf32>
    %117 = arith.addf %108, %116 : vector<8x128xf32>
    %c2_i32_30 = arith.constant 2 : i32
    %118 = tpu.dynamic_rotate %98 by %c2_i32_30 dim 1 : vector<8x128xf32>, i32 -> vector<8x128xf32>
    %c2_i32_31 = arith.constant 2 : i32
    %119 = vector.broadcast %c2_i32_31 : i32 to vector<8x128xi32>
    %120 = arith.cmpi sge, %6, %119 : vector<8x128xi32>
    %cst_32 = arith.constant 0.000000e+00 : f32
    %121 = vector.broadcast %cst_32 : f32 to vector<8x128xf32>
    %122 = arith.select %120, %118, %121 : vector<8x128xi1>, vector<8x128xf32>
    %123 = vector.extract_strided_slice %3 {offsets = [0, 2], sizes = [8, 1], strides = [1, 1]} : vector<8x9xf32> to vector<8x1xf32>
    %124 = vector.broadcast %123 : vector<8x1xf32> to vector<8x128xf32>
    %125 = arith.mulf %124, %122 : vector<8x128xf32>
    %126 = arith.addf %117, %125 : vector<8x128xf32>
    %c1_i32_33 = arith.constant 1 : i32
    %127 = tpu.dynamic_rotate %98 by %c1_i32_33 dim 1 : vector<8x128xf32>, i32 -> vector<8x128xf32>
    %c1_i32_34 = arith.constant 1 : i32
    %128 = vector.broadcast %c1_i32_34 : i32 to vector<8x128xi32>
    %129 = arith.cmpi sge, %6, %128 : vector<8x128xi32>
    %cst_35 = arith.constant 0.000000e+00 : f32
    %130 = vector.broadcast %cst_35 : f32 to vector<8x128xf32>
    %131 = arith.select %129, %127, %130 : vector<8x128xi1>, vector<8x128xf32>
    %132 = vector.extract_strided_slice %3 {offsets = [0, 3], sizes = [8, 1], strides = [1, 1]} : vector<8x9xf32> to vector<8x1xf32>
    %133 = vector.broadcast %132 : vector<8x1xf32> to vector<8x128xf32>
    %134 = arith.mulf %133, %131 : vector<8x128xf32>
    %135 = arith.addf %126, %134 : vector<8x128xf32>
    %136 = vector.extract_strided_slice %3 {offsets = [0, 4], sizes = [8, 1], strides = [1, 1]} : vector<8x9xf32> to vector<8x1xf32>
    %137 = vector.broadcast %136 : vector<8x1xf32> to vector<8x128xf32>
    %138 = arith.mulf %137, %98 : vector<8x128xf32>
    %139 = arith.addf %135, %138 : vector<8x128xf32>
    %c127_i32_36 = arith.constant 127 : i32
    %140 = tpu.dynamic_rotate %98 by %c127_i32_36 dim 1 : vector<8x128xf32>, i32 -> vector<8x128xf32>
    %c127_i32_37 = arith.constant 127 : i32
    %141 = vector.broadcast %c127_i32_37 : i32 to vector<8x128xi32>
    %142 = arith.cmpi slt, %6, %141 : vector<8x128xi32>
    %cst_38 = arith.constant 0.000000e+00 : f32
    %143 = vector.broadcast %cst_38 : f32 to vector<8x128xf32>
    %144 = arith.select %142, %140, %143 : vector<8x128xi1>, vector<8x128xf32>
    %145 = vector.extract_strided_slice %3 {offsets = [0, 5], sizes = [8, 1], strides = [1, 1]} : vector<8x9xf32> to vector<8x1xf32>
    %146 = vector.broadcast %145 : vector<8x1xf32> to vector<8x128xf32>
    %147 = arith.mulf %146, %144 : vector<8x128xf32>
    %148 = arith.addf %139, %147 : vector<8x128xf32>
    %c126_i32_39 = arith.constant 126 : i32
    %149 = tpu.dynamic_rotate %98 by %c126_i32_39 dim 1 : vector<8x128xf32>, i32 -> vector<8x128xf32>
    %c126_i32_40 = arith.constant 126 : i32
    %150 = vector.broadcast %c126_i32_40 : i32 to vector<8x128xi32>
    %151 = arith.cmpi slt, %6, %150 : vector<8x128xi32>
    %cst_41 = arith.constant 0.000000e+00 : f32
    %152 = vector.broadcast %cst_41 : f32 to vector<8x128xf32>
    %153 = arith.select %151, %149, %152 : vector<8x128xi1>, vector<8x128xf32>
    %154 = vector.extract_strided_slice %3 {offsets = [0, 6], sizes = [8, 1], strides = [1, 1]} : vector<8x9xf32> to vector<8x1xf32>
    %155 = vector.broadcast %154 : vector<8x1xf32> to vector<8x128xf32>
    %156 = arith.mulf %155, %153 : vector<8x128xf32>
    %157 = arith.addf %148, %156 : vector<8x128xf32>
    %c125_i32_42 = arith.constant 125 : i32
    %158 = tpu.dynamic_rotate %98 by %c125_i32_42 dim 1 : vector<8x128xf32>, i32 -> vector<8x128xf32>
    %c125_i32_43 = arith.constant 125 : i32
    %159 = vector.broadcast %c125_i32_43 : i32 to vector<8x128xi32>
    %160 = arith.cmpi slt, %6, %159 : vector<8x128xi32>
    %cst_44 = arith.constant 0.000000e+00 : f32
    %161 = vector.broadcast %cst_44 : f32 to vector<8x128xf32>
    %162 = arith.select %160, %158, %161 : vector<8x128xi1>, vector<8x128xf32>
    %163 = vector.extract_strided_slice %3 {offsets = [0, 7], sizes = [8, 1], strides = [1, 1]} : vector<8x9xf32> to vector<8x1xf32>
    %164 = vector.broadcast %163 : vector<8x1xf32> to vector<8x128xf32>
    %165 = arith.mulf %164, %162 : vector<8x128xf32>
    %166 = arith.addf %157, %165 : vector<8x128xf32>
    %c124_i32_45 = arith.constant 124 : i32
    %167 = tpu.dynamic_rotate %98 by %c124_i32_45 dim 1 : vector<8x128xf32>, i32 -> vector<8x128xf32>
    %c124_i32_46 = arith.constant 124 : i32
    %168 = vector.broadcast %c124_i32_46 : i32 to vector<8x128xi32>
    %169 = arith.cmpi slt, %6, %168 : vector<8x128xi32>
    %cst_47 = arith.constant 0.000000e+00 : f32
    %170 = vector.broadcast %cst_47 : f32 to vector<8x128xf32>
    %171 = arith.select %169, %167, %170 : vector<8x128xi1>, vector<8x128xf32>
    %172 = vector.extract_strided_slice %3 {offsets = [0, 8], sizes = [8, 1], strides = [1, 1]} : vector<8x9xf32> to vector<8x1xf32>
    %173 = vector.broadcast %172 : vector<8x1xf32> to vector<8x128xf32>
    %174 = arith.mulf %173, %171 : vector<8x128xf32>
    %175 = arith.addf %166, %174 : vector<8x128xf32>
    %176 = vector.broadcast %5 : vector<8x1xf32> to vector<8x128xf32>
    %177 = arith.addf %175, %176 : vector<8x128xf32>
    %cst_48 = arith.constant 5.000000e-01 : f32
    %178 = vector.broadcast %cst_48 : f32 to vector<8x128xf32>
    %179 = arith.mulf %178, %177 : vector<8x128xf32>
    %cst_49 = arith.constant 4.471500e-02 : f32
    %180 = vector.broadcast %cst_49 : f32 to vector<8x128xf32>
    %181 = arith.mulf %180, %177 : vector<8x128xf32>
    %182 = arith.mulf %181, %177 : vector<8x128xf32>
    %183 = arith.mulf %182, %177 : vector<8x128xf32>
    %184 = arith.addf %177, %183 : vector<8x128xf32>
    %cst_50 = arith.constant 0.797884583 : f32
    %185 = vector.broadcast %cst_50 : f32 to vector<8x128xf32>
    %186 = arith.mulf %185, %184 : vector<8x128xf32>
    %187 = math.tanh %186 : vector<8x128xf32>
    %cst_51 = arith.constant 1.000000e+00 : f32
    %188 = vector.broadcast %cst_51 : f32 to vector<8x128xf32>
    %189 = arith.addf %188, %187 : vector<8x128xf32>
    %190 = arith.mulf %179, %189 : vector<8x128xf32>
    %191 = arith.addf %190, %0 : vector<8x128xf32>
    %c0_52 = arith.constant 0 : index
    %c0_53 = arith.constant 0 : index
    %192 = vector.load %arg3[%c0_52, %c0_53] : memref<8x128xf32, #tpu.memory_space<vmem>>, vector<8x128xf32>
    tpu.vector_store %arg3[%c0_52, %c0_53], %191 {strides = array<i32>} : memref<8x128xf32, #tpu.memory_space<vmem>>, vector<8x128xf32>,
    return
  }
  func.func @transform_0(%arg0: i32) -> (i32, i32) {
    %c0_i32 = arith.constant 0 : i32
    %c0_i32_0 = arith.constant 0 : i32
    return %arg0, %c0_i32 : i32, i32
  }
  func.func @transform_1(%arg0: i32) -> (i32, i32) {
    %c0_i32 = arith.constant 0 : i32
    %c0_i32_0 = arith.constant 0 : i32
    %c0_i32_1 = arith.constant 0 : i32
    return %c0_i32, %c0_i32_0 : i32, i32
  }
  func.func @transform_2(%arg0: i32) -> (i32, i32) {
    %c0_i32 = arith.constant 0 : i32
    %c0_i32_0 = arith.constant 0 : i32
    return %arg0, %c0_i32 : i32, i32
  }
}

</mosaic_0001>

<bundles_post_ra>
// kernel: tcn_unit.1
= control target key start
LH: loop header
LB: loop body
LE: loop exit
PB: predicated region body
PF: predicated region fallthrough
CT: control target
= control target key end

     0   :  { %s511_s9 = smov 0   ;;  %s630_s0 = inlined_call_operand.vmem [shape: f32[16,128], index: 0, kind: input, shape index: {}, may-alias: {0,2}]   ;;  %s631_s1 = inlined_call_operand.vmem [shape: f32[8,20], index: 1, kind: input, shape index: {}]   ;;  %s632_s2 = inlined_call_operand.vmem [shape: f32[16,128], index: 2, kind: output, shape index: {}, may-alias: {0,2}]  }
   0x1 LB: > { %s391_s10 = sadd.s32 4294967295, %s466_s9   ;;  %p395_p0 = scmp.ge.s32.totalorder %s466_s9, 1  ;;  %s466_s9 = sphi %s511_s9, %s12_s9  }
   0x2   : > { %p111_p1 = scmp.lt.s32.totalorder %s466_s9, 3 }
   0x4   : > { %p112_p2 = pnand %p395_p0, %p111_p1 }
   0x5   : > { %v522_v0 = vld [vmem:[%s631_s1] sm:$0xff] (!%p112_p2)  ;;  %p131_p3 = scmp.lt.s32.totalorder (!%p112_p2), %s391_s10, 1  ;;  %v468_v1 = vmov (!%p112_p2), 2   ;;  %v469_v2 = vmov (!%p112_p2), 0   ;;  %v470_v3 = vmov (!%p112_p2), 3   ;;  %v471_v4 = vmov (!%p112_p2), 1  }
   0x6   : > { %115 = sbr.rel (%p112_p2) target bundleno = 377 (0x179), region = 28  ;;  %438 = vset.pattern.permute.xlu1 (!%p112_p2), %v468_v1  ;;  %436 = vset.pattern.permute.xlu0 (!%p112_p2), %v469_v2  ;;  %s472_s17 = smov (!%p112_p2), 3   ;;  %v474_v6 = vmov (!%p112_p2), 4   ;;  %v475_v7 = vmov (!%p112_p2), 7   ;;  %v478_v8 = vmov (!%p112_p2), 5   ;;  %v479_v9 = vmov (!%p112_p2), 6  }
   0x7   : > { %169 = vperm.xlu1 (!%p112_p2), %438, %v522_v0   ;;  %149 = vperm.xlu0 (!%p112_p2), %436, %v522_v0   ;;  %s473_s18 = smov (!%p112_p2), 4   ;;  %s476_s19 = smov (!%p112_p2), 2   ;;  %v481_v10 = vmov (!%p112_p2), 18   ;;  %v483_v11 = vmov (!%p112_p2), 8   ;;  %v484_v12 = vmov (!%p112_p2), 10   ;;  %v486_v13 = vmov (!%p112_p2), 9  }
   0x8   : > { %s477_s20 = smov (!%p112_p2), 1   ;;  %s480_s21 = smov (!%p112_p2), 126   ;;  %v487_v14 = vmov (!%p112_p2), 13   ;;  %v489_v15 = vmov (!%p112_p2), 11   ;;  %v490_v16 = vmov (!%p112_p2), 12   ;;  %v491_v17 = vmov (!%p112_p2), 16  }
   0x9   : > { %s482_s22 = smov (!%p112_p2), 127   ;;  %s485_s23 = smov (!%p112_p2), 125   ;;  %v492_v18 = vmov (!%p112_p2), 14   ;;  %v493_v19 = vmov (!%p112_p2), 15   ;;  %v494_v20 = vmov (!%p112_p2), 17   ;;  %v495_v21 = vmov (!%p112_p2), 19  }
   0xa   : > { %s488_s24 = smov (!%p112_p2), 124   ;;  %v141_v26 = vlaneseq (!%p112_p2) }
   0xb   : > { %439 = vset.pattern.permute.xlu1 (!%p112_p2), %v470_v3  ;;  %437 = vset.pattern.permute.xlu0 (!%p112_p2), %v471_v4 }
   0xc   : > { %179 = vperm.xlu1 (!%p112_p2), %439, %v522_v0   ;;  %159 = vperm.xlu0 (!%p112_p2), %437, %v522_v0   ;;  %v569_v29 = vand.u32 (!%p112_p2), 127, %v141_v26 }
   0xd   : > { %s634_s10 = smov (!%p131_p3, %s391_s10), 1 }
   0xe   : > { %s396_s13 = sshll.u32 %s634_s10, 3  ;;  %vm156_vm0 = vcmp.ge.s32.totalorder %v569_v29, 3  ;;  %vm145_vm1 = vcmp.ge.s32.totalorder %v569_v29, 4  ;;  %vm166_vm2 = vcmp.ge.s32.totalorder %v569_v29, 2  ;;  %vm176_vm3 = vcmp.ge.s32.totalorder %v569_v29, 1 }
   0xf   : > { %s134_s16 = scalar_lea.vmem %s630_s0, %s396_s13  ;;  %vm192_vm4 = vcmp.lt.s32.totalorder %v569_v29, 127  ;;  %vm202_vm5 = vcmp.lt.s32.totalorder %v569_v29, 126  ;;  %vm212_vm6 = vcmp.lt.s32.totalorder %v569_v29, 125  ;;  %vm222_vm7 = vcmp.lt.s32.totalorder %v569_v29, 124  ;;  %s138_s27 = scalar_lea.vmem %s632_s2, %s396_s13 }
  0x10   : > { %v536_v5 = vld [vmem:[%s134_s16] sm:$0xff]  ;;  %440 = vset.pattern.permute.xlu1 %v474_v6  ;;  %443 = vset.pattern.permute.xlu0 %v475_v7 }
  0x11   : > { %154 = vrot.lane.b32.xlu0 %v536_v5, %s472_s17  ;;  %143 = vrot.lane.b32.xlu1 %v536_v5, %s473_s18 }
  0x15   : > { %164 = vrot.lane.b32.xlu0 %v536_v5, %s476_s19  ;;  %185 = vperm.xlu1 %440, %v522_v0  }
  0x19   : > { %174 = vrot.lane.b32.xlu0 %v536_v5, %s477_s20  ;;  %441 = vset.pattern.permute.xlu1 %v478_v8 }
  0x1a   : > { %195 = vperm.xlu1 %441, %v522_v0  }
  0x1d   : > { %215 = vperm.xlu0 %443, %v522_v0  }
  0x1e   : > { %442 = vset.pattern.permute.xlu1 %v479_v9 }
  0x1f   : > { %205 = vperm.xlu1 %442, %v522_v0  }
  0x21   : > { %200 = vrot.lane.b32.xlu0 %v536_v5, %s480_s21 }
  0x22   : > { %445 = vset.pattern.permute.xlu0 %v481_v10 }
  0x23   : > { %190 = vrot.lane.b32.xlu1 %v536_v5, %s482_s22 }
  0x24   : > { %444 = vset.pattern.permute.xlu1 %v483_v11 }
  0x25   : > { %231 = vperm.xlu0 %445, %v522_v0  }
  0x27   : > { %225 = vperm.xlu1 %444, %v522_v0  }
  0x29   : > { %447 = vset.pattern.permute.xlu0 %v484_v12 }
  0x2a   : > { %257 = vperm.xlu0 %447, %v522_v0  }
  0x2b   : > { %210 = vrot.lane.b32.xlu1 %v536_v5, %s485_s23 }
  0x2c   : > { %446 = vset.pattern.permute.xlu1 %v486_v13 }
  0x2e   : > { %450 = vset.pattern.permute.xlu0 %v487_v14 }
  0x2f   : > { %220 = vrot.lane.b32.xlu1 %v536_v5, %s488_s24  ;;  %281 = vperm.xlu0 %450, %v522_v0  }
  0x33   : > { %248 = vperm.xlu1 %446, %v522_v0   ;;  %453 = vset.pattern.permute.xlu0 %v491_v17 }
  0x34   : > { %308 = vperm.xlu0 %453, %v522_v0  }
  0x37   : > { %448 = vset.pattern.permute.xlu1 %v489_v15 }
  0x38   : > { %266 = vperm.xlu1 %448, %v522_v0   ;;  %455 = vset.pattern.permute.xlu0 %v495_v21 }
  0x3c   : > { %449 = vset.pattern.permute.xlu1 %v490_v16 }
  0x3d   : > { %275 = vperm.xlu1 %449, %v522_v0  }
  0x41   : > { %451 = vset.pattern.permute.xlu1 %v492_v18 }
  0x42   : > { %290 = vperm.xlu1 %451, %v522_v0  }
  0x46   : > { %452 = vset.pattern.permute.xlu1 %v493_v19 }
  0x47   : > { %299 = vperm.xlu1 %452, %v522_v0  }
  0x4b   : > { %454 = vset.pattern.permute.xlu1 %v494_v20 }
  0x4c   : > { %317 = vperm.xlu1 %454, %v522_v0  }
  0x86   : > { %v170_v22 = vpop.permute.xlu1 %169  ;;  %v150_v23 = vpop.permute.xlu0 %149 }
  0x8b   : > { %v180_v24 = vpop.permute.xlu1 %179  ;;  %v160_v25 = vpop.permute.xlu0 %159 }
  0x8f   : > { %v155_v27 = vpop.permute.xlu0 %154  ;;  %v144_v28 = vpop.permute.xlu1 %143 }
  0x90   : > { %v157_v32 = vsel %vm156_vm0, %v155_v27, 0.0  ;;  %v146_v33 = vsel %vm145_vm1, %v144_v28, 0.0 }
  0x91   : > { %v162_v37 = vmul.f32 %v160_v25, %v157_v32  ;;  %v152_v38 = vmul.f32 %v150_v23, %v146_v33 }
  0x93   : > { %v165_v30 = vpop.permute.xlu0 %164  ;;  %v163_v42 = vadd.f32 %v162_v37, %v152_v38 }
  0x94   : > { %v186_v31 = vpop.permute.xlu1 %185  ;;  %v167_v36 = vsel %vm166_vm2, %v165_v30, 0.0 }
  0x95   : > { %v172_v40 = vmul.f32 %v170_v22, %v167_v36  ;;  %v188_v49 = vmul.f32 %v186_v31, %v536_v5 }
  0x97   : > { %v175_v35 = vpop.permute.xlu0 %174  ;;  %v173_v45 = vadd.f32 %v172_v40, %v163_v42 }
  0x98   : > { %v177_v39 = vsel %vm176_vm3, %v175_v35, 0.0 }
  0x99   : > { %v196_v34 = vpop.permute.xlu1 %195  ;;  %v182_v43 = vmul.f32 %v180_v24, %v177_v39 }
  0x9b   : > { %v183_v48 = vadd.f32 %v182_v43, %v173_v45 }
  0x9c   : > { %v216_v44 = vpop.permute.xlu0 %215 }
  0x9d   : > { %v189_v53 = vadd.f32 %v188_v49, %v183_v48 }
  0x9e   : > { %v206_v41 = vpop.permute.xlu1 %205 }
  0xa0   : > { %v201_v50 = vpop.permute.xlu0 %200 }
  0xa1   : > { %v203_v54 = vsel %vm202_vm5, %v201_v50, 0.0 }
  0xa2   : > { %v191_v46 = vpop.permute.xlu1 %190  ;;  %v208_v58 = vmul.f32 %v206_v41, %v203_v54 }
  0xa3   : > { %v193_v47 = vsel %vm192_vm4, %v191_v46, 0.0 }
  0xa4   : > { %v198_v51 = vmul.f32 %v196_v34, %v193_v47  ;;  %v232_v2 = vpop.permute.xlu0 %231 }
  0xa6   : > { %v226_v52 = vpop.permute.xlu1 %225  ;;  %v199_v55 = vadd.f32 %v198_v51, %v189_v53 }
  0xa8   : > { %v209_v60 = vadd.f32 %v208_v58, %v199_v55 }
  0xa9   : > { %v258_v19 = vpop.permute.xlu0 %257 }
  0xaa   : > { %v211_v56 = vpop.permute.xlu1 %210 }
  0xab   : > { %v213_v57 = vsel %vm212_vm6, %v211_v56, 0.0 }
  0xac   : > { %v218_v59 = vmul.f32 %v216_v44, %v213_v57 }
  0xae   : > { %v221_v61 = vpop.permute.xlu1 %220  ;;  %v219_v63 = vadd.f32 %v218_v59, %v209_v60  ;;  %v282_v21 = vpop.permute.xlu0 %281 }
  0xaf   : > { %v223_v62 = vsel %vm222_vm7, %v221_v61, 0.0 }
  0xb0   : > { %v228_v1 = vmul.f32 %v226_v52, %v223_v62 }
  0xb2   : > { %v229_v3 = vadd.f32 %v228_v1, %v219_v63  ;;  %v249_v15 = vpop.permute.xlu1 %248 }
  0xb3   : > { %v309_v22 = vpop.permute.xlu0 %308 }
  0xb4   : > { %v234_v4 = vadd.f32 %v232_v2, %v229_v3 }
  0xb6   : > { %v236_v6 = vmul.f32 0.044715, %v234_v4  ;;  %v235_v12 = vmul.f32 0.5, %v234_v4 }
  0xb7   : > { %v267_v16 = vpop.permute.xlu1 %266 }
  0xb8   : > { %v237_v7 = vmul.f32 %v236_v6, %v234_v4 }
  0xba   : > { %v238_v8 = vmul.f32 %v237_v7, %v234_v4 }
  0xbc   : > { %v239_v9 = vadd.f32 %v238_v8, %v234_v4  ;;  %v276_v17 = vpop.permute.xlu1 %275 }
  0xbe   : > { %v240_v10 = vmul.f32 0.7978846, %v239_v9 }
  0xc0   : > { %456 = vtanh.f32 %v240_v10 }
  0xc1   : > { %v291_v18 = vpop.permute.xlu1 %290 }
  0xc6   : > { %v300_v20 = vpop.permute.xlu1 %299 }
  0xca   : > { %v457_v11 = vpop.eup %456 }
  0xcb   : > { %v242_v13 = vadd.f32 1.0, %v457_v11  ;;  %v318_v23 = vpop.permute.xlu1 %317 }
  0xcd   : > { %v243_v14 = vmul.f32 %v242_v13, %v235_v12 }
  0xcf   : > { %253 = vrot.lane.b32.xlu1 %v243_v14, %s472_s17  ;;  %244 = vrot.lane.b32.xlu0 %v243_v14, %s473_s18  ;;  %v284_v41 = vmul.f32 %v282_v21, %v243_v14 }
  0xd3   : > { %262 = vrot.lane.b32.xlu1 %v243_v14, %s476_s19  ;;  %271 = vrot.lane.b32.xlu0 %v243_v14, %s477_s20 }
  0xd7   : > { %286 = vrot.lane.b32.xlu1 %v243_v14, %s482_s22  ;;  %295 = vrot.lane.b32.xlu0 %v243_v14, %s480_s21 }
  0xdb   : > { %304 = vrot.lane.b32.xlu1 %v243_v14, %s485_s23  ;;  %323 = vperm.xlu0 %455, %v522_v0  }
  0xdf   : > { %313 = vrot.lane.b32.xlu1 %v243_v14, %s488_s24 }
 0x141   : > { %v245_v24 = vpop.permute.xlu0 %244  ;;  %v254_v25 = vpop.permute.xlu1 %253 }
 0x142   : > { %v246_v26 = vsel %vm145_vm1, %v245_v24, 0.0  ;;  %v255_v27 = vsel %vm156_vm0, %v254_v25, 0.0 }
 0x143   : > { %v251_v0 = vmul.f32 %v249_v15, %v246_v26  ;;  %v260_v28 = vmul.f32 %v258_v19, %v255_v27 }
 0x145   : > { %v272_v30 = vpop.permute.xlu0 %271  ;;  %v263_v31 = vpop.permute.xlu1 %262  ;;  %v261_v34 = vadd.f32 %v260_v28, %v251_v0 }
 0x146   : > { %v273_v32 = vsel %vm176_vm3, %v272_v30, 0.0  ;;  %v264_v33 = vsel %vm166_vm2, %v263_v31, 0.0 }
 0x147   : > { %v269_v35 = vmul.f32 %v267_v16, %v264_v33  ;;  %v278_v36 = vmul.f32 %v276_v17, %v273_v32 }
 0x149   : > { %v270_v37 = vadd.f32 %v269_v35, %v261_v34  ;;  %v296_v38 = vpop.permute.xlu0 %295  ;;  %v287_v39 = vpop.permute.xlu1 %286 }
 0x14a   : > { %v288_v40 = vsel %vm192_vm4, %v287_v39, 0.0  ;;  %v297_v43 = vsel %vm202_vm5, %v296_v38, 0.0 }
 0x14b   : > { %v279_v42 = vadd.f32 %v278_v36, %v270_v37  ;;  %v293_v45 = vmul.f32 %v291_v18, %v288_v40  ;;  %v302_v47 = vmul.f32 %v300_v20, %v297_v43 }
 0x14d   : > { %v285_v44 = vadd.f32 %v284_v41, %v279_v42  ;;  %v305_v46 = vpop.permute.xlu1 %304 }
 0x14e   : > { %v306_v49 = vsel %vm212_vm6, %v305_v46, 0.0 }
 0x14f   : > { %v294_v48 = vadd.f32 %v293_v45, %v285_v44  ;;  %v311_v53 = vmul.f32 %v309_v22, %v306_v49 }
 0x151   : > { %v303_v50 = vadd.f32 %v302_v47, %v294_v48  ;;  %v314_v51 = vpop.permute.xlu1 %313 }
 0x152   : > { %v315_v52 = vsel %vm222_vm7, %v314_v51, 0.0 }
 0x153   : > { %v312_v54 = vadd.f32 %v311_v53, %v303_v50  ;;  %v320_v55 = vmul.f32 %v318_v23, %v315_v52 }
 0x155   : > { %v321_v56 = vadd.f32 %v320_v55, %v312_v54 }
 0x15a   : > { %v324_v57 = vpop.permute.xlu0 %323 }
 0x15b   : > { %v326_v58 = vadd.f32 %v324_v57, %v321_v56 }
 0x15d   : > { %v328_v59 = vmul.f32 0.044715, %v326_v58  ;;  %v327_v2 = vmul.f32 0.5, %v326_v58 }
 0x15f   : > { %v329_v60 = vmul.f32 %v328_v59, %v326_v58 }
 0x161   : > { %v330_v61 = vmul.f32 %v329_v60, %v326_v58 }
 0x163   : > { %v331_v62 = vadd.f32 %v330_v61, %v326_v58 }
 0x165   : > { %v332_v63 = vmul.f32 0.7978846, %v331_v62 }
 0x167   : > { %458 = vtanh.f32 %v332_v63 }
 0x171   : > { %v459_v1 = vpop.eup %458 }
 0x172   : > { %v334_v3 = vadd.f32 1.0, %v459_v1 }
 0x174   : > { %v335_v4 = vmul.f32 %v334_v3, %v327_v2 }
 0x176   : > { %v336_v29 = vadd.f32 %v335_v4, %v536_v5 }
 0x178   : > { %337 = vst [vmem:[%s138_s27] sm:$0xff] %v336_v29 }
 0x179 PF: > { %s12_s9 = sadd.s32 1, %s466_s9  }
 0x17a   : > { %p9_p4 = scmp.ge.s32.totalorder %s12_s9, 4  }
 0x17c   :  { %11 = sbr.rel (!%p9_p4) target bundleno = 1 (0x1), region = 58 }

</bundles_post_ra>
